<compile_context>
chip_gen: v7x
topology: tpu7x:2x2x1
jax: 0.10.0
libtpu: 0.0.40
codegen_flags: <defaults>
</compile_context>

<pallas_src>
import jax
import jax.numpy as jnp
from jax.experimental import pallas as pl
from jax.experimental.pallas import tpu as pltpu

BN_EPS = 1e-5
IN_DIM = 784
K1_PAD = 896           # 7 * 128, zero-padded contraction dim for layer 1
NUM_CLASSES = 10
NC_PAD = 128            # lane-dense output: [probs(10) | conf(1) | zeros(117)]


def _round_up(x, m):
    return (x + m - 1) // m * m


# ---------------------------------------------------------------------------
# Fused Pallas kernel: the entire Discriminator forward pass
# ---------------------------------------------------------------------------
def _discriminator_kernel(x_ref, w1_ref, c1_ref, w2_ref, c2_ref,
                          w3_ref, b3_ref, out_ref):
    # ---- Linear(784, 256) + BatchNorm1d(256) + LeakyReLU(0.2) ----
    # BN scale is pre-folded into w1; only the additive shift remains (f32).
    h = jnp.dot(x_ref[...], w1_ref[...], preferred_element_type=jnp.float32)
    h = h + c1_ref[...]
    h = jnp.maximum(h, 0.2 * h)                   # LeakyReLU(0.2)
    # TODO(synk): Dropout(p=0.1) is the inference-mode identity; training-mode
    # stochastic masking is not emulated.

    # ---- Linear(256, 256) + BatchNorm1d(256) + LeakyReLU() ----
    h = jnp.dot(h.astype(jnp.bfloat16), w2_ref[...],
                preferred_element_type=jnp.float32)
    h = h + c2_ref[...]
    h = jnp.maximum(h, 0.01 * h)                  # LeakyReLU() default slope

    # ---- Linear(256, 10) + Softmax(dim=1), padded to 128 lanes ----
    logits = jnp.dot(h.astype(jnp.bfloat16), w3_ref[...],
                     preferred_element_type=jnp.float32) + b3_ref[...]
    col = jax.lax.broadcasted_iota(jnp.int32, logits.shape, 1)
    valid = col < NUM_CLASSES
    logits = jnp.where(valid, logits, jnp.float32(-1e30))
    m = jnp.max(logits, axis=-1, keepdims=True)
    e = jnp.exp(logits - m)                       # padded lanes -> 0
    probs = e * pl.reciprocal(jnp.sum(e, axis=-1, keepdims=True), approx=True)

    # ---- predict(): 1 - 1/(1 + sum(exp(probs), -1)) over the 10 classes ----
    s = jnp.sum(jnp.where(valid, jnp.exp(probs), 0.0), axis=-1, keepdims=True)
    conf = 1.0 - pl.reciprocal(1.0 + s, approx=True)

    # Single lane-dense store: probs in cols 0..9, confidence in col 10.
    out_ref[...] = probs + jnp.where(col == NUM_CLASSES, conf, 0.0)


# ---------------------------------------------------------------------------
# Wrapper
# ---------------------------------------------------------------------------
def discriminator_forward(folded, x):
    B = x.shape[0]
    x2 = x.reshape(B, -1).astype(jnp.float32)     # torch: x.reshape(B, 784)

    kp = folded["w1"].shape[0]                    # 896
    k1 = folded["w1"].shape[1]                    # 256
    k2 = folded["w2"].shape[1]                    # 256
    ncp = folded["w3"].shape[1]                   # 128

    # Row tiling: small batches -> single 8-row block; large batches stream
    # 256-row blocks across the grid while weights stay VMEM-resident.
    tm = min(_round_up(B, 8), 256)
    Bp = _round_up(B, tm)
    xp = jnp.pad(x2, ((0, Bp - B), (0, kp - x2.shape[1]))).astype(jnp.bfloat16)

    flops = 2 * Bp * (kp * k1 + k1 * k2 + k2 * ncp)
    weight_bytes = 2 * (folded["w1"].size + folded["w2"].size + folded["w3"].size) \
        + 4 * (folded["c1"].size + folded["c2"].size + folded["b3"].size)
    cost = pl.CostEstimate(
        flops=flops,
        transcendentals=2 * Bp * ncp,
        bytes_accessed=Bp * kp * 2 + weight_bytes + Bp * ncp * 4,
    )

    out = pl.pallas_call(
        _discriminator_kernel,
        out_shape=jax.ShapeDtypeStruct((Bp, ncp), jnp.float32),
        grid_spec=pltpu.PrefetchScalarGridSpec(
            num_scalar_prefetch=0,
            grid=(Bp // tm,),
            in_specs=[
                pl.BlockSpec((tm, kp), lambda i: (i, 0)),    # x tile (bf16)
                pl.BlockSpec((kp, k1), lambda i: (0, 0)),    # w1 (bf16, BN-folded)
                pl.BlockSpec((1, k1), lambda i: (0, 0)),     # shift1 (f32)
                pl.BlockSpec((k1, k2), lambda i: (0, 0)),    # w2 (bf16, BN-folded)
                pl.BlockSpec((1, k2), lambda i: (0, 0)),     # shift2 (f32)
                pl.BlockSpec((k2, ncp), lambda i: (0, 0)),   # w3 (bf16, N-padded)
                pl.BlockSpec((1, ncp), lambda i: (0, 0)),    # b3 (f32, N-padded)
            ],
            out_specs=pl.BlockSpec((tm, ncp), lambda i: (i, 0)),
        ),
        compiler_params=pltpu.CompilerParams(
            dimension_semantics=("parallel",)),
        cost_estimate=cost,
    )(xp, folded["w1"], folded["c1"], folded["w2"], folded["c2"],
      folded["w3"], folded["b3"])

    # torch.cat((softmax_out, confidence), dim=1) -> (B, 11), already fused.
    return out[:B, :NUM_CLASSES + 1]


# ---------------------------------------------------------------------------
# Deterministic synthetic parameters (PyTorch-style init) + BN folding
# ---------------------------------------------------------------------------
def _linear_init(key, fan_in, fan_out):
    kw, kb = jax.random.split(key)
    bound = 1.0 / jnp.sqrt(jnp.float32(fan_in))
    w = jax.random.uniform(kw, (fan_in, fan_out), jnp.float32, -bound, bound)
    b = jax.random.uniform(kb, (fan_out,), jnp.float32, -bound, bound)
    return w, b


def _bn_init(key, c):
    kg, kb, km, kv = jax.random.split(key, 4)
    return dict(
        gamma=1.0 + 0.1 * jax.random.normal(kg, (c,), jnp.float32),
        beta=0.1 * jax.random.normal(kb, (c,), jnp.float32),
        mean=0.1 * jax.random.normal(km, (c,), jnp.float32),
        var=jnp.abs(1.0 + 0.1 * jax.random.normal(kv, (c,), jnp.float32)),
    )


def init_discriminator_params(key, in_dim=IN_DIM, k=256, num_classes=NUM_CLASSES):
    k1, k2, k3, k4, k5 = jax.random.split(key, 5)
    w1, b1 = _linear_init(k1, in_dim, k)
    w2, b2 = _linear_init(k2, k, 256)
    w3, b3 = _linear_init(k3, 256, num_classes)
    return dict(w1=w1, b1=b1, bn1=_bn_init(k4, k),
                w2=w2, b2=b2, bn2=_bn_init(k5, 256),
                w3=w3, b3=b3)


def fold_params(p, eps=BN_EPS):
    # BatchNorm(x @ W + b) == x @ (W * s) + ((b - mean) * s + beta)
    # Scales folded into the weights in f32 BEFORE the bf16 cast.
    # TODO(synk): BatchNorm1d is reproduced with running (inference)
    # statistics; training-mode batch statistics are not emulated.
    s1 = p["bn1"]["gamma"] / jnp.sqrt(p["bn1"]["var"] + eps)
    c1 = (p["b1"] - p["bn1"]["mean"]) * s1 + p["bn1"]["beta"]
    s2 = p["bn2"]["gamma"] / jnp.sqrt(p["bn2"]["var"] + eps)
    c2 = (p["b2"] - p["bn2"]["mean"]) * s2 + p["bn2"]["beta"]

    w1 = p["w1"] * s1[None, :]
    w2 = p["w2"] * s2[None, :]
    # Pad layer-1 contraction dim 784 -> 896 (7x128) with zero rows.
    w1 = jnp.pad(w1, ((0, K1_PAD - w1.shape[0]), (0, 0)))
    # Pad layer-3 output dim 10 -> 128 with zero columns (masked in-kernel).
    w3 = jnp.pad(p["w3"], ((0, 0), (0, NC_PAD - p["w3"].shape[1])))
    b3 = jnp.pad(p["b3"], (0, NC_PAD - p["b3"].shape[0]))

    return dict(
        w1=w1.astype(jnp.bfloat16),
        c1=c1.reshape(1, -1).astype(jnp.float32),
        w2=w2.astype(jnp.bfloat16),
        c2=c2.reshape(1, -1).astype(jnp.float32),
        w3=w3.astype(jnp.bfloat16),
        b3=b3.reshape(1, -1).astype(jnp.float32),
    )


# ---------------------------------------------------------------------------
# Pure-JAX f32 reference (mirrors the PyTorch forward in eval mode)
# ---------------------------------------------------------------------------
def reference_forward(p, x, eps=BN_EPS):
    xf = x.reshape(x.shape[0], -1).astype(jnp.float32)
    h = xf @ p["w1"] + p["b1"]
    h = ((h - p["bn1"]["mean"]) / jnp.sqrt(p["bn1"]["var"] + eps)
         * p["bn1"]["gamma"] + p["bn1"]["beta"])
    h = jnp.where(h >= 0, h, 0.2 * h)
    h = h @ p["w2"] + p["b2"]
    h = ((h - p["bn2"]["mean"]) / jnp.sqrt(p["bn2"]["var"] + eps)
         * p["bn2"]["gamma"] + p["bn2"]["beta"])
    h = jnp.where(h >= 0, h, 0.01 * h)
    logits = h @ p["w3"] + p["b3"]
    probs = jax.nn.softmax(logits, axis=1)
    conf = 1.0 - 1.0 / (1.0 + jnp.sum(jnp.exp(probs), axis=-1, keepdims=True))
    return jnp.concatenate([probs, conf], axis=1)


if __name__ == "__main__":
    key = jax.random.PRNGKey(0)
    pkey, xkey = jax.random.split(key)

    params = init_discriminator_params(pkey)
    folded = fold_params(params)

    # Input reshapable to (B, 784), MNIST-like.
    x = jax.random.normal(xkey, (2, 1, 28, 28), jnp.float32)

    fwd = jax.jit(discriminator_forward)
    out = jax.block_until_ready(fwd(folded, x))

    assert out.shape == (2, 11), out.shape
    assert out.dtype == jnp.float32

    ref = reference_forward(params, x)
    max_err = float(jnp.max(jnp.abs(out - ref)))
    assert max_err < 2e-2, f"max abs err vs f32 reference = {max_err}"

    print("KERNEL_OK")
</pallas_src>

<mosaic_0001>
module attributes {stable_mosaic.version = 11 : i64} {
  func.func @_discriminator_kernel(%arg0: i32, %arg1: memref<8x896xbf16, #tpu.memory_space<vmem>>, %arg2: memref<896x256xbf16, #tpu.memory_space<vmem>>, %arg3: memref<1x256xf32, #tpu.memory_space<vmem>>, %arg4: memref<256x256xbf16, #tpu.memory_space<vmem>>, %arg5: memref<1x256xf32, #tpu.memory_space<vmem>>, %arg6: memref<256x128xbf16, #tpu.memory_space<vmem>>, %arg7: memref<1x128xf32, #tpu.memory_space<vmem>>, %arg8: memref<8x128xf32, #tpu.memory_space<vmem>>) attributes {dimension_semantics = [#tpu.dimension_semantics<parallel>], iteration_bounds = array<i64: 1>, scalar_prefetch = 0 : i64, scratch_operands = 0 : i64, tpu.core_type = #tpu.core_type<tc>, window_params = [{transform_indices = @transform_0, window_bounds = array<i64: 8, 896>}, {pipeline_mode = #tpu.pipeline_mode<synchronous>, transform_indices = @transform_1, window_bounds = array<i64: 896, 256>}, {pipeline_mode = #tpu.pipeline_mode<synchronous>, transform_indices = @transform_2, window_bounds = array<i64: 1, 256>}, {pipeline_mode = #tpu.pipeline_mode<synchronous>, transform_indices = @transform_3, window_bounds = array<i64: 256, 256>}, {pipeline_mode = #tpu.pipeline_mode<synchronous>, transform_indices = @transform_4, window_bounds = array<i64: 1, 256>}, {pipeline_mode = #tpu.pipeline_mode<synchronous>, transform_indices = @transform_5, window_bounds = array<i64: 256, 128>}, {pipeline_mode = #tpu.pipeline_mode<synchronous>, transform_indices = @transform_6, window_bounds = array<i64: 1, 128>}, {transform_indices = @transform_7, window_bounds = array<i64: 8, 128>}]} {
    %c0 = arith.constant 0 : index
    %c0_0 = arith.constant 0 : index
    %0 = vector.load %arg1[%c0, %c0_0] : memref<8x896xbf16, #tpu.memory_space<vmem>>, vector<8x896xbf16>
    %c0_1 = arith.constant 0 : index
    %c0_2 = arith.constant 0 : index
    %1 = vector.load %arg2[%c0_1, %c0_2] : memref<896x256xbf16, #tpu.memory_space<vmem>>, vector<896x256xbf16>
    %cst = arith.constant dense<0.000000e+00> : vector<8x256xf32>
    %2 = tpu.matmul %0, %1, %cst {dimension_numbers = #tpu.dot_dimension_numbers<[1], [0], [0], [1], [0, 0, 1, 1], [], []>} : vector<8x896xbf16>, vector<896x256xbf16>, vector<8x256xf32> -> vector<8x256xf32>
    %c0_3 = arith.constant 0 : index
    %c0_4 = arith.constant 0 : index
    %3 = vector.load %arg3[%c0_3, %c0_4] : memref<1x256xf32, #tpu.memory_space<vmem>>, vector<1x256xf32>
    %4 = vector.broadcast %3 : vector<1x256xf32> to vector<8x256xf32>
    %5 = arith.addf %2, %4 : vector<8x256xf32>
    %cst_5 = arith.constant 2.000000e-01 : f32
    %6 = vector.broadcast %cst_5 : f32 to vector<8x256xf32>
    %7 = arith.mulf %6, %5 : vector<8x256xf32>
    %8 = arith.maximumf %5, %7 : vector<8x256xf32>
    %9 = arith.truncf %8 : vector<8x256xf32> to vector<8x256xbf16>
    %c0_6 = arith.constant 0 : index
    %c0_7 = arith.constant 0 : index
    %10 = vector.load %arg4[%c0_6, %c0_7] : memref<256x256xbf16, #tpu.memory_space<vmem>>, vector<256x256xbf16>
    %cst_8 = arith.constant dense<0.000000e+00> : vector<8x256xf32>
    %11 = tpu.matmul %9, %10, %cst_8 {dimension_numbers = #tpu.dot_dimension_numbers<[1], [0], [0], [1], [0, 0, 1, 1], [], []>} : vector<8x256xbf16>, vector<256x256xbf16>, vector<8x256xf32> -> vector<8x256xf32>
    %c0_9 = arith.constant 0 : index
    %c0_10 = arith.constant 0 : index
    %12 = vector.load %arg5[%c0_9, %c0_10] : memref<1x256xf32, #tpu.memory_space<vmem>>, vector<1x256xf32>
    %13 = vector.broadcast %12 : vector<1x256xf32> to vector<8x256xf32>
    %14 = arith.addf %11, %13 : vector<8x256xf32>
    %cst_11 = arith.constant 0.00999999977 : f32
    %15 = vector.broadcast %cst_11 : f32 to vector<8x256xf32>
    %16 = arith.mulf %15, %14 : vector<8x256xf32>
    %17 = arith.maximumf %14, %16 : vector<8x256xf32>
    %18 = arith.truncf %17 : vector<8x256xf32> to vector<8x256xbf16>
    %c0_12 = arith.constant 0 : index
    %c0_13 = arith.constant 0 : index
    %19 = vector.load %arg6[%c0_12, %c0_13] : memref<256x128xbf16, #tpu.memory_space<vmem>>, vector<256x128xbf16>
    %cst_14 = arith.constant dense<0.000000e+00> : vector<8x128xf32>
    %20 = tpu.matmul %18, %19, %cst_14 {dimension_numbers = #tpu.dot_dimension_numbers<[1], [0], [0], [1], [0, 0, 1, 1], [], []>} : vector<8x256xbf16>, vector<256x128xbf16>, vector<8x128xf32> -> vector<8x128xf32>
    %c0_15 = arith.constant 0 : index
    %c0_16 = arith.constant 0 : index
    %21 = vector.load %arg7[%c0_15, %c0_16] : memref<1x128xf32, #tpu.memory_space<vmem>>, vector<1x128xf32>
    %22 = vector.broadcast %21 : vector<1x128xf32> to vector<8x128xf32>
    %23 = arith.addf %20, %22 : vector<8x128xf32>
    %24 = tpu.iota {dimensions = array<i32: 1>} : vector<8x128xi32>
    %c10_i32 = arith.constant 10 : i32
    %25 = vector.broadcast %c10_i32 : i32 to vector<8x128xi32>
    %26 = arith.cmpi slt, %24, %25 : vector<8x128xi32>
    %cst_17 = arith.constant -1.000000e+30 : f32
    %27 = vector.broadcast %cst_17 : f32 to vector<8x128xf32>
    %28 = arith.select %26, %23, %27 : vector<8x128xi1>, vector<8x128xf32>
    %cst_18 = arith.constant dense<0xFF800000> : vector<8xf32>
    %29 = vector.multi_reduction <maximumf>, %28, %cst_18 [1] : vector<8x128xf32> to vector<8xf32>
    %30 = vector.shape_cast %29 : vector<8xf32> to vector<8x1xf32>
    %31 = vector.broadcast %30 : vector<8x1xf32> to vector<8x128xf32>
    %32 = arith.subf %28, %31 : vector<8x128xf32>
    %33 = math.exp %32 : vector<8x128xf32>
    %cst_19 = arith.constant dense<0.000000e+00> : vector<8xf32>
    %34 = vector.multi_reduction <add>, %33, %cst_19 [1] : vector<8x128xf32> to vector<8xf32>
    %35 = vector.shape_cast %34 : vector<8xf32> to vector<8x1xf32>
    %36 = tpu.reciprocal %35 {approx = true} : vector<8x1xf32> -> vector<8x1xf32>
    %37 = vector.broadcast %36 : vector<8x1xf32> to vector<8x128xf32>
    %38 = arith.mulf %33, %37 : vector<8x128xf32>
    %39 = math.exp %38 : vector<8x128xf32>
    %cst_20 = arith.constant 0.000000e+00 : f32
    %40 = vector.broadcast %cst_20 : f32 to vector<8x128xf32>
    %41 = arith.select %26, %39, %40 : vector<8x128xi1>, vector<8x128xf32>
    %cst_21 = arith.constant dense<0.000000e+00> : vector<8xf32>
    %42 = vector.multi_reduction <add>, %41, %cst_21 [1] : vector<8x128xf32> to vector<8xf32>
    %43 = vector.shape_cast %42 : vector<8xf32> to vector<8x1xf32>
    %cst_22 = arith.constant 1.000000e+00 : f32
    %44 = vector.broadcast %cst_22 : f32 to vector<8x1xf32>
    %45 = arith.addf %44, %43 : vector<8x1xf32>
    %46 = tpu.reciprocal %45 {approx = true} : vector<8x1xf32> -> vector<8x1xf32>
    %cst_23 = arith.constant 1.000000e+00 : f32
    %47 = vector.broadcast %cst_23 : f32 to vector<8x1xf32>
    %48 = arith.subf %47, %46 : vector<8x1xf32>
    %c10_i32_24 = arith.constant 10 : i32
    %49 = vector.broadcast %c10_i32_24 : i32 to vector<8x128xi32>
    %50 = arith.cmpi eq, %24, %49 : vector<8x128xi32>
    %cst_25 = arith.constant 0.000000e+00 : f32
    %51 = vector.shape_cast %48 : vector<8x1xf32> to vector<8x1xf32>
    %52 = vector.broadcast %51 : vector<8x1xf32> to vector<8x128xf32>
    %53 = vector.broadcast %cst_25 : f32 to vector<8x128xf32>
    %54 = arith.select %50, %52, %53 : vector<8x128xi1>, vector<8x128xf32>
    %55 = arith.addf %38, %54 : vector<8x128xf32>
    %c0_26 = arith.constant 0 : index
    %c0_27 = arith.constant 0 : index
    %56 = vector.load %arg8[%c0_26, %c0_27] : memref<8x128xf32, #tpu.memory_space<vmem>>, vector<8x128xf32>
    tpu.vector_store %arg8[%c0_26, %c0_27], %55 {strides = array<i32>} : memref<8x128xf32, #tpu.memory_space<vmem>>, vector<8x128xf32>,
    return
  }
  func.func @transform_0(%arg0: i32) -> (i32, i32) {
    %c0_i32 = arith.constant 0 : i32
    %c0_i32_0 = arith.constant 0 : i32
    return %arg0, %c0_i32 : i32, i32
  }
  func.func @transform_1(%arg0: i32) -> (i32, i32) {
    %c0_i32 = arith.constant 0 : i32
    %c0_i32_0 = arith.constant 0 : i32
    %c0_i32_1 = arith.constant 0 : i32
    return %c0_i32, %c0_i32_0 : i32, i32
  }
  func.func @transform_2(%arg0: i32) -> (i32, i32) {
    %c0_i32 = arith.constant 0 : i32
    %c0_i32_0 = arith.constant 0 : i32
    %c0_i32_1 = arith.constant 0 : i32
    return %c0_i32, %c0_i32_0 : i32, i32
  }
  func.func @transform_3(%arg0: i32) -> (i32, i32) {
    %c0_i32 = arith.constant 0 : i32
    %c0_i32_0 = arith.constant 0 : i32
    %c0_i32_1 = arith.constant 0 : i32
    return %c0_i32, %c0_i32_0 : i32, i32
  }
  func.func @transform_4(%arg0: i32) -> (i32, i32) {
    %c0_i32 = arith.constant 0 : i32
    %c0_i32_0 = arith.constant 0 : i32
    %c0_i32_1 = arith.constant 0 : i32
    return %c0_i32, %c0_i32_0 : i32, i32
  }
  func.func @transform_5(%arg0: i32) -> (i32, i32) {
    %c0_i32 = arith.constant 0 : i32
    %c0_i32_0 = arith.constant 0 : i32
    %c0_i32_1 = arith.constant 0 : i32
    return %c0_i32, %c0_i32_0 : i32, i32
  }
  func.func @transform_6(%arg0: i32) -> (i32, i32) {
    %c0_i32 = arith.constant 0 : i32
    %c0_i32_0 = arith.constant 0 : i32
    %c0_i32_1 = arith.constant 0 : i32
    return %c0_i32, %c0_i32_0 : i32, i32
  }
  func.func @transform_7(%arg0: i32) -> (i32, i32) {
    %c0_i32 = arith.constant 0 : i32
    %c0_i32_0 = arith.constant 0 : i32
    return %arg0, %c0_i32 : i32, i32
  }
}

</mosaic_0001>

<bundles_post_ra>
// kernel: discriminator_forward.1
= control target key start
LH: loop header
LB: loop body
LE: loop exit
PB: predicated region body
PF: predicated region fallthrough
CT: control target
= control target key end

     0   :  { %12 = vsyncpa [#allocation3], 0  ;;  %s2054_s0 = inlined_call_operand.vmem [shape: bf16[8,896], index: 0, kind: input, shape index: {}]   ;;  %s2055_s1 = inlined_call_operand.hbm [shape: bf16[896,256], index: 1, kind: input, shape index: {}]   ;;  %s2056_s2 = inlined_call_operand.vmem [shape: f32[1,256], index: 2, kind: input, shape index: {}]   ;;  %s2057_s3 = inlined_call_operand.hbm [shape: bf16[256,256], index: 3, kind: input, shape index: {}]   ;;  %s2058_s4 = inlined_call_operand.vmem [shape: f32[1,256], index: 4, kind: input, shape index: {}]   ;;  %s2059_s5 = inlined_call_operand.vmem [shape: bf16[256,128], index: 5, kind: input, shape index: {}]   ;;  %s2060_s6 = inlined_call_operand.vmem [shape: f32[1,128], index: 6, kind: input, shape index: {}]   ;;  %s2061_s7 = inlined_call_operand.vmem [shape: f32[8,128], index: 7, kind: output, shape index: {}]  }
   0x1   :  { %13 = vsyncpa [#allocation5], 0  ;;  %s1897_s24 = smov [#allocation2]   ;;  %s1849_s28 = scalar_lea.hbm %s2055_s1, 14336 }
   0x2   :  { %s21_s25 = sshll.u32 %s1897_s24, 4  ;;  %p1850_p0 = scmp.ne.s32.totalorder %s2055_s1, %s1849_s28  ;;  %s22_s25 = int_to_ptr.vmem [resolvable:$true] %s21_s25 }
   0x3   :  { %p1853_p1 = scmp.lt.u32.totalorder %s1849_s28, %s2055_s1 }
   0x5   :  { %p1855_p2 = pnand %p1853_p1, %p1850_p0 }
   0x7   :  { %1858 = shalt.err (!%p1855_p2)
}
   0x8   :  { %s1859_s10 = scalar_lea.vmem %s22_s25, 14336  ;;  %p1864_p4 = scmp.lt.s32.totalorder %s22_s25, %s22_s25 }
   0x9   :  { %p1860_p3 = scmp.ne.s32.totalorder %s22_s25, %s1859_s10  ;;  %p1865_p5 = scmp.lt.s32.totalorder %s1859_s10, %s1859_s10 }
   0xb   :  { %p1866_p6 = por %p1865_p5, %p1864_p4 }
   0xd   :  { %p1867_p7 = pnand %p1866_p6, %p1860_p3 }
   0xf   :  { %1870 = shalt.err (!%p1867_p7)
}
  0x10   :  { %s1898_s11 = smov 128   ;;  %s1899_s12 = smov 8  }
  0x11   :  { %27 = dma.hbm_to_vmem [thread:$0]  %s2055_s1, 14336, %s22_s25, [#allocation3], %s1898_s11, %s1898_s11, %s1899_s12  }
  0x12   :  { %s1900_s15 = smov [#allocation4]   ;;  %s1871_s19 = scalar_lea.hbm %s2057_s3, 4096 }
  0x13   :  { %s35_s16 = sshll.u32 %s1900_s15, 4  ;;  %p1872_p8 = scmp.ne.s32.totalorder %s2057_s3, %s1871_s19  ;;  %s36_s16 = int_to_ptr.vmem [resolvable:$true] %s35_s16 }
  0x14   :  { %p1875_p9 = scmp.lt.u32.totalorder %s1871_s19, %s2057_s3 }
  0x16   :  { %p1877_p10 = pnand %p1875_p9, %p1872_p8 }
  0x18   :  { %1880 = shalt.err (!%p1877_p10)
}
  0x19   :  { %s1881_s24 = scalar_lea.vmem %s36_s16, 4096  ;;  %p1886_p12 = scmp.lt.s32.totalorder %s36_s16, %s36_s16 }
  0x1a   :  { %p1882_p11 = scmp.ne.s32.totalorder %s36_s16, %s1881_s24  ;;  %p1887_p13 = scmp.lt.s32.totalorder %s1881_s24, %s1881_s24 }
  0x1c   :  { %p1888_p0 = por %p1887_p13, %p1886_p12 }
  0x1e   :  { %p1889_p1 = pnand %p1888_p0, %p1882_p11 }
  0x20   :  { %1892 = shalt.err (!%p1889_p1)
}
  0x21   :  { %41 = dma.hbm_to_vmem [thread:$0]  %s2057_s3, 4096, %s36_s16, [#allocation5], %s1898_s11, %s1898_s11, %s1899_s12  }
  0x22   :  { %1893 = dma.done.wait [#allocation3], 14336  }
  0x23   :  { %1894 = vsyncadd [#allocation3], 4294952960 }
  0x24   :  { %1895 = dma.done.wait [#allocation5], 4096  }
  0x25   :  { %1896 = vsyncadd [#allocation5], 4294963200  ;;  %v1602_v0 = vld [vmem:[#allocation2 + $0x104] ss:$8 sps:$4 sm:$0xff]   ;;  %v1604_v1 = vld [vmem:[#allocation2 + $0x100] ss:$8 sps:$4 sm:$0xff]  }
  0x26   :  { %809 = vmatprep.subr.bf16.mxu0 %v1602_v0  ;;  %v1605_v2 = vld [vmem:[#allocation2 + $0x114] ss:$8 sps:$4 sm:$0xff]   ;;  %v1607_v3 = vld [vmem:[#allocation2 + $0x110] ss:$8 sps:$4 sm:$0xff]   ;;  %v1608_v4 = vld [vmem:[#allocation2 + $0x124] ss:$8 sps:$4 sm:$0xff]  }
  0x27   :  { %810 = vmatpush1.bf16.msra.mxu0 %v1604_v1  ;;  %v1610_v5 = vld [vmem:[#allocation2 + $0x120] ss:$8 sps:$4 sm:$0xff]   ;;  %v1611_v6 = vld [vmem:[#allocation2 + $0x134] ss:$8 sps:$4 sm:$0xff]   ;;  %v1613_v7 = vld [vmem:[#allocation2 + $0x130] ss:$8 sps:$4 sm:$0xff]  }
  0x28   :  { %811 = vmatprep.subr.bf16.mxu0 %v1605_v2  ;;  %v1614_v8 = vld [vmem:[#allocation2 + $0x144] ss:$8 sps:$4 sm:$0xff]   ;;  %v1616_v9 = vld [vmem:[#allocation2 + $0x140] ss:$8 sps:$4 sm:$0xff]   ;;  %v1617_v10 = vld [vmem:[#allocation2 + $0x154] ss:$8 sps:$4 sm:$0xff]  }
  0x29   :  { %v1619_v11 = vld [vmem:[#allocation2 + $0x150] ss:$8 sps:$4 sm:$0xff]   ;;  %v1620_v12 = vld [vmem:[#allocation2 + $0x164] ss:$8 sps:$4 sm:$0xff]   ;;  %v1622_v15 = vld [vmem:[#allocation2 + $0x160] ss:$8 sps:$4 sm:$0xff]  }
  0x2a   :  { %v1969_v13 = vld [vmem:[%s2054_s0 + $0x8] sm:$0xff]  ;;  %v1623_v16 = vld [vmem:[#allocation2 + $0x174] ss:$8 sps:$4 sm:$0xff]   ;;  %v1625_v17 = vld [vmem:[#allocation2 + $0x170] ss:$8 sps:$4 sm:$0xff]  }
  0x2b   :  { %812 = vmatpush1.bf16.msra.mxu0 %v1607_v3  ;;  %v1398_v14 = vcombine.high %v1969_v13, %v1969_v13  ;;  %v1626_v18 = vld [vmem:[#allocation2 + $0x184] ss:$8 sps:$4 sm:$0xff]   ;;  %v1628_v19 = vld [vmem:[#allocation2 + $0x180] ss:$8 sps:$4 sm:$0xff]   ;;  %v1629_v20 = vld [vmem:[#allocation2 + $0x194] ss:$8 sps:$4 sm:$0xff]   ;;  %v1397_v54 = vcombine.low %v1969_v13, %v1969_v13 }
  0x2c   :  { %813 = vmatprep.subr.bf16.mxu0 %v1608_v4  ;;  %v1673_v21 = vld [vmem:[#allocation2 + $0x4] ss:$8 sps:$4 sm:$0xff]   ;;  %v1675_v22 = vld [vmem:[#allocation2] ss:$8 sps:$4 sm:$0xff]   ;;  %v1679_v23 = vld [vmem:[#allocation2 + $0x14] ss:$8 sps:$4 sm:$0xff]  }
  0x2d   :  { %841 = vmatprep.mubr.bf16.mxu0 %v1398_v14  ;;  %768 = vmatprep.subr.bf16.mxu1 %v1673_v21  ;;  %v1681_v24 = vld [vmem:[#allocation2 + $0x10] ss:$8 sps:$4 sm:$0xff]   ;;  %v1632_v26 = vld [vmem:[#allocation2 + $0x1a4] ss:$8 sps:$4 sm:$0xff]   ;;  %v1634_v28 = vld [vmem:[#allocation2 + $0x1a0] ss:$8 sps:$4 sm:$0xff]  }
  0x2e   :  { %769 = vmatpush1.bf16.msra.mxu1 %v1675_v22  ;;  %v1631_v25 = vld [vmem:[#allocation2 + $0x190] ss:$8 sps:$4 sm:$0xff]   ;;  %v1685_v27 = vld [vmem:[#allocation2 + $0x24] ss:$8 sps:$4 sm:$0xff]   ;;  %v1687_v29 = vld [vmem:[#allocation2 + $0x20] ss:$8 sps:$4 sm:$0xff]  }
  0x2f   :  { %814 = vmatpush1.bf16.msra.mxu0 %v1610_v5  ;;  %770 = vmatprep.subr.bf16.mxu1 %v1679_v23  ;;  %v1691_v30 = vld [vmem:[#allocation2 + $0x34] ss:$8 sps:$4 sm:$0xff]   ;;  %v1637_v32 = vld [vmem:[#allocation2 + $0x1b0] ss:$8 sps:$4 sm:$0xff]   ;;  %v1697_v34 = vld [vmem:[#allocation2 + $0x44] ss:$8 sps:$4 sm:$0xff]  }
  0x30   :  { %815 = vmatprep.subr.bf16.mxu0 %v1611_v6  ;;  %v1635_v31 = vld [vmem:[#allocation2 + $0x1b4] ss:$8 sps:$4 sm:$0xff]   ;;  %v1693_v33 = vld [vmem:[#allocation2 + $0x30] ss:$8 sps:$4 sm:$0xff]   ;;  %v1638_v35 = vld [vmem:[#allocation2 + $0x1c4] ss:$8 sps:$4 sm:$0xff]  }
  0x31   :  { %v1640_v36 = vld [vmem:[#allocation2 + $0x1c0] ss:$8 sps:$4 sm:$0xff]   ;;  %v1703_v38 = vld [vmem:[#allocation2 + $0x54] ss:$8 sps:$4 sm:$0xff]   ;;  %v1643_v40 = vld [vmem:[#allocation2 + $0x1d0] ss:$8 sps:$4 sm:$0xff]  }
  0x32   :  { %771 = vmatpush1.bf16.msra.mxu1 %v1681_v24  ;;  %v1699_v37 = vld [vmem:[#allocation2 + $0x40] ss:$8 sps:$4 sm:$0xff]   ;;  %v1641_v39 = vld [vmem:[#allocation2 + $0x1d4] ss:$8 sps:$4 sm:$0xff]   ;;  %v1705_v41 = vld [vmem:[#allocation2 + $0x50] ss:$8 sps:$4 sm:$0xff]  }
  0x33   :  { %816 = vmatpush1.bf16.msra.mxu0 %v1613_v7  ;;  %772 = vmatprep.subr.bf16.mxu1 %v1685_v27  ;;  %v1709_v42 = vld [vmem:[#allocation2 + $0x64] ss:$8 sps:$4 sm:$0xff]   ;;  %v1646_v44 = vld [vmem:[#allocation2 + $0x1e0] ss:$8 sps:$4 sm:$0xff]   ;;  %v1715_v46 = vld [vmem:[#allocation2 + $0x74] ss:$8 sps:$4 sm:$0xff]  }
  0x34   :  { %817 = vmatprep.subr.bf16.mxu0 %v1614_v8  ;;  %v1644_v43 = vld [vmem:[#allocation2 + $0x1e4] ss:$8 sps:$4 sm:$0xff]   ;;  %v1711_v45 = vld [vmem:[#allocation2 + $0x60] ss:$8 sps:$4 sm:$0xff]   ;;  %v1647_v47 = vld [vmem:[#allocation2 + $0x1f4] ss:$8 sps:$4 sm:$0xff]  }
  0x35   :  { %v1649_v48 = vld [vmem:[#allocation2 + $0x1f0] ss:$8 sps:$4 sm:$0xff]   ;;  %v1721_v50 = vld [vmem:[#allocation2 + $0x84] ss:$8 sps:$4 sm:$0xff]   ;;  %v1652_v52 = vld [vmem:[#allocation2 + $0x200] ss:$8 sps:$4 sm:$0xff]  }
  0x36   :  { %773 = vmatpush1.bf16.msra.mxu1 %v1687_v29  ;;  %v1717_v49 = vld [vmem:[#allocation2 + $0x70] ss:$8 sps:$4 sm:$0xff]   ;;  %v1654_v51 = vld [vmem:[#allocation2 + $0x204] ss:$8 sps:$4 sm:$0xff]   ;;  %v1723_v55 = vld [vmem:[#allocation2 + $0x80] ss:$8 sps:$4 sm:$0xff]  }
  0x37   :  { %818 = vmatpush1.bf16.msra.mxu0 %v1616_v9  ;;  %774 = vmatprep.subr.bf16.mxu1 %v1691_v30  ;;  %v1976_v53 = vld [vmem:[%s2054_s0 + $0x10] sm:$0xff]  ;;  %v1735_v61 = vld [vmem:[#allocation2 + $0xa4] ss:$8 sps:$4 sm:$0xff]   ;;  %v1658_v63 = vld [vmem:[#allocation2 + $0x220] ss:$8 sps:$4 sm:$0xff]  }
  0x38   :  { %819 = vmatprep.subr.bf16.mxu0 %v1617_v10  ;;  %v1727_v56 = vld [vmem:[#allocation2 + $0x94] ss:$8 sps:$4 sm:$0xff]   ;;  %v1400_v58 = vcombine.high %v1976_v53, %v1976_v53  ;;  %v1655_v59 = vld [vmem:[#allocation2 + $0x210] ss:$8 sps:$4 sm:$0xff]   ;;  %v1660_v62 = vld [vmem:[#allocation2 + $0x224] ss:$8 sps:$4 sm:$0xff]  }
  0x39   :  { %v1657_v57 = vld [vmem:[#allocation2 + $0x214] ss:$8 sps:$4 sm:$0xff]   ;;  %v1729_v60 = vld [vmem:[#allocation2 + $0x90] ss:$8 sps:$4 sm:$0xff]   ;;  %v1737_v0 = vld [vmem:[#allocation2 + $0xa0] ss:$8 sps:$4 sm:$0xff]  }
  0x3a   :  { %775 = vmatpush1.bf16.msra.mxu1 %v1693_v33  ;;  %v1741_v1 = vld [vmem:[#allocation2 + $0xb4] ss:$8 sps:$4 sm:$0xff]   ;;  %v1743_v3 = vld [vmem:[#allocation2 + $0xb0] ss:$8 sps:$4 sm:$0xff]   ;;  %v55_v4 = vld [vmem:[%s2054_s0] sm:$0xff] }
  0x3b   :  { %820 = vmatpush1.bf16.msra.mxu0 %v1619_v11  ;;  %776 = vmatprep.subr.bf16.mxu1 %v1697_v34  ;;  %v1663_v2 = vld [vmem:[#allocation2 + $0x234] ss:$8 sps:$4 sm:$0xff]   ;;  %v1661_v5 = vld [vmem:[#allocation2 + $0x230] ss:$8 sps:$4 sm:$0xff]   ;;  %v1747_v6 = vld [vmem:[#allocation2 + $0xc4] ss:$8 sps:$4 sm:$0xff]   ;;  %v1396_v7 = vcombine.high %v55_v4, %v55_v4  ;;  %v1395_v27 = vcombine.low %v55_v4, %v55_v4 }
  0x3c   :  { %821 = vmatprep.subr.bf16.mxu0 %v1620_v12  ;;  %v1666_v8 = vld [vmem:[#allocation2 + $0x244] ss:$8 sps:$4 sm:$0xff]   ;;  %v1664_v9 = vld [vmem:[#allocation2 + $0x240] ss:$8 sps:$4 sm:$0xff]   ;;  %v1753_v11 = vld [vmem:[#allocation2 + $0xd4] ss:$8 sps:$4 sm:$0xff]  }
  0x3d   :  { %800 = vmatprep.mubr.bf16.mxu1 %v1396_v7  ;;  %v1749_v10 = vld [vmem:[#allocation2 + $0xc0] ss:$8 sps:$4 sm:$0xff]   ;;  %v1669_v12 = vld [vmem:[#allocation2 + $0x254] ss:$8 sps:$4 sm:$0xff]   ;;  %v1667_v13 = vld [vmem:[#allocation2 + $0x250] ss:$8 sps:$4 sm:$0xff]  }
  0x3e   :  { %777 = vmatpush1.bf16.msra.mxu1 %v1699_v37  ;;  %v1755_v14 = vld [vmem:[#allocation2 + $0xd0] ss:$8 sps:$4 sm:$0xff]   ;;  %v1779_v23 = vld [vmem:[#allocation4 + $0x4] ss:$8 sps:$4 sm:$0xff]   ;;  %v1690_v29 = vld [vmem:[#allocation2 + $0x294] ss:$8 sps:$4 sm:$0xff]  }
  0x3f   :  { %822 = vmatpush1.bf16.msra.mxu0 %v1622_v15  ;;  %778 = vmatprep.subr.bf16.mxu1 %v1703_v38  ;;  %v1759_v15 = vld [vmem:[#allocation2 + $0xe4] ss:$8 sps:$4 sm:$0xff]   ;;  %v1676_v21 = vld [vmem:[#allocation2 + $0x270] ss:$8 sps:$4 sm:$0xff]   ;;  %v1783_v34 = vld [vmem:[#allocation4 + $0x20] ss:$8 sps:$4 sm:$0xff]  }
  0x40   :  { %823 = vmatprep.subr.bf16.mxu0 %v1623_v16  ;;  %v1672_v16 = vld [vmem:[#allocation2 + $0x264] ss:$8 sps:$4 sm:$0xff]   ;;  %v1767_v22 = vld [vmem:[#allocation2 + $0xf0] ss:$8 sps:$4 sm:$0xff]   ;;  %v1702_v37 = vld [vmem:[#allocation2 + $0x2b4] ss:$8 sps:$4 sm:$0xff]  }
  0x41   :  { %v1684_v24 = vld [vmem:[#allocation2 + $0x284] ss:$8 sps:$4 sm:$0xff]   ;;  %v1780_v30 = vld [vmem:[#allocation4 + $0x10] ss:$8 sps:$4 sm:$0xff]   ;;  %v1752_v7 = vld [vmem:[#allocation2 + $0x334] ss:$8 sps:$4 sm:$0xff]  }
  0x42   :  { %779 = vmatpush1.bf16.msra.mxu1 %v1705_v41  ;;  %v1696_v33 = vld [vmem:[#allocation2 + $0x2a4] ss:$8 sps:$4 sm:$0xff]   ;;  %v1786_v38 = vld [vmem:[#allocation4 + $0x30] ss:$8 sps:$4 sm:$0xff]  }
  0x43   :  { %824 = vmatpush1.bf16.msra.mxu0 %v1625_v17  ;;  %780 = vmatprep.subr.bf16.mxu1 %v1709_v42  ;;  %v1670_v17 = vld [vmem:[#allocation2 + $0x260] ss:$8 sps:$4 sm:$0xff]   ;;  %v1708_v41 = vld [vmem:[#allocation2 + $0x2c4] ss:$8 sps:$4 sm:$0xff]  }
  0x44   :  { %825 = vmatprep.subr.bf16.mxu0 %v1626_v18  ;;  %v1761_v18 = vld [vmem:[#allocation2 + $0xe0] ss:$8 sps:$4 sm:$0xff]   ;;  %v1746_v4 = vld [vmem:[#allocation2 + $0x324] ss:$8 sps:$4 sm:$0xff]  }
  0x45   :  { %v1789_v42 = vld [vmem:[#allocation4 + $0x40] ss:$8 sps:$4 sm:$0xff]  }
  0x46   :  { %781 = vmatpush1.bf16.msra.mxu1 %v1711_v45  ;;  %v1714_v45 = vld [vmem:[#allocation2 + $0x2d4] ss:$8 sps:$4 sm:$0xff]  }
  0x47   :  { %826 = vmatpush1.bf16.msra.mxu0 %v1628_v19  ;;  %782 = vmatprep.subr.bf16.mxu1 %v1715_v46  ;;  %v1765_v19 = vld [vmem:[#allocation2 + $0xf4] ss:$8 sps:$4 sm:$0xff]   ;;  %v1792_v46 = vld [vmem:[#allocation4 + $0x50] ss:$8 sps:$4 sm:$0xff]  }
  0x48   :  { %827 = vmatprep.subr.bf16.mxu0 %v1629_v20  ;;  %v1678_v20 = vld [vmem:[#allocation2 + $0x274] ss:$8 sps:$4 sm:$0xff]  }
  0x4a   :  { %783 = vmatpush1.bf16.msra.mxu1 %v1717_v49  ;;  %v1720_v49 = vld [vmem:[#allocation2 + $0x2e4] ss:$8 sps:$4 sm:$0xff]  }
  0x4b   :  { %828 = vmatpush1.bf16.msra.mxu0 %v1631_v25  ;;  %784 = vmatprep.subr.bf16.mxu1 %v1721_v50  ;;  %v1777_v25 = vld [vmem:[#allocation4] ss:$8 sps:$4 sm:$0xff]  }
  0x4c   :  { %829 = vmatprep.subr.bf16.mxu0 %v1632_v26  ;;  %v1682_v26 = vld [vmem:[#allocation2 + $0x280] ss:$8 sps:$4 sm:$0xff]  }
  0x4d   :  { %v1795_v50 = vld [vmem:[#allocation4 + $0x60] ss:$8 sps:$4 sm:$0xff]  }
  0x4e   :  { %785 = vmatpush1.bf16.msra.mxu1 %v1723_v55  ;;  %v1798_v55 = vld [vmem:[#allocation4 + $0x70] ss:$8 sps:$4 sm:$0xff]  }
  0x4f   :  { %830 = vmatpush1.bf16.msra.mxu0 %v1634_v28  ;;  %786 = vmatprep.subr.bf16.mxu1 %v1727_v56  ;;  %v1782_v28 = vld [vmem:[#allocation4 + $0x14] ss:$8 sps:$4 sm:$0xff]   ;;  %v1724_v56 = vld [vmem:[#allocation2 + $0x2f0] ss:$8 sps:$4 sm:$0xff]  }
  0x50   :  { %831 = vmatprep.subr.bf16.mxu0 %v1635_v31  ;;  %v1688_v31 = vld [vmem:[#allocation2 + $0x290] ss:$8 sps:$4 sm:$0xff]  }
  0x52   :  { %787 = vmatpush1.bf16.msra.mxu1 %v1729_v60  ;;  %v1801_v60 = vld [vmem:[#allocation4 + $0x80] ss:$8 sps:$4 sm:$0xff]  }
  0x53   :  { %832 = vmatpush1.bf16.msra.mxu0 %v1637_v32  ;;  %788 = vmatprep.subr.bf16.mxu1 %v1735_v61  ;;  %v1785_v32 = vld [vmem:[#allocation4 + $0x24] ss:$8 sps:$4 sm:$0xff]   ;;  %v1732_v61 = vld [vmem:[#allocation2 + $0x300] ss:$8 sps:$4 sm:$0xff]  }
  0x54   :  { %833 = vmatprep.subr.bf16.mxu0 %v1638_v35  ;;  %v1694_v35 = vld [vmem:[#allocation2 + $0x2a0] ss:$8 sps:$4 sm:$0xff]  }
  0x56   :  { %789 = vmatpush1.bf16.msra.mxu1 %v1737_v0  ;;  %v1804_v0 = vld [vmem:[#allocation4 + $0x90] ss:$8 sps:$4 sm:$0xff]  }
  0x57   :  { %834 = vmatpush1.bf16.msra.mxu0 %v1640_v36  ;;  %790 = vmatprep.subr.bf16.mxu1 %v1741_v1  ;;  %v1788_v36 = vld [vmem:[#allocation4 + $0x34] ss:$8 sps:$4 sm:$0xff]   ;;  %v1738_v1 = vld [vmem:[#allocation2 + $0x310] ss:$8 sps:$4 sm:$0xff]  }
  0x58   :  { %835 = vmatprep.subr.bf16.mxu0 %v1641_v39  ;;  %v1700_v39 = vld [vmem:[#allocation2 + $0x2b0] ss:$8 sps:$4 sm:$0xff]  }
  0x5a   :  { %791 = vmatpush1.bf16.msra.mxu1 %v1743_v3  ;;  %v1809_v3 = vld [vmem:[#allocation4 + $0xa4] ss:$8 sps:$4 sm:$0xff]  }
  0x5b   :  { %836 = vmatpush1.bf16.msra.mxu0 %v1643_v40  ;;  %792 = vmatprep.subr.bf16.mxu1 %v1747_v6  ;;  %v1791_v40 = vld [vmem:[#allocation4 + $0x44] ss:$8 sps:$4 sm:$0xff]   ;;  %v1812_v6 = vld [vmem:[#allocation4 + $0xb4] ss:$8 sps:$4 sm:$0xff]  }
  0x5c   :  { %837 = vmatprep.subr.bf16.mxu0 %v1644_v43  ;;  %v1706_v43 = vld [vmem:[#allocation2 + $0x2c0] ss:$8 sps:$4 sm:$0xff]  }
  0x5e   :  { %793 = vmatpush1.bf16.msra.mxu1 %v1749_v10  ;;  %v1758_v10 = vld [vmem:[#allocation2 + $0x344] ss:$8 sps:$4 sm:$0xff]  }
  0x5f   :  { %838 = vmatpush1.bf16.msra.mxu0 %v1646_v44  ;;  %794 = vmatprep.subr.bf16.mxu1 %v1753_v11  ;;  %v1794_v44 = vld [vmem:[#allocation4 + $0x54] ss:$8 sps:$4 sm:$0xff]   ;;  %v1756_v11 = vld [vmem:[#allocation2 + $0x340] ss:$8 sps:$4 sm:$0xff]  }
  0x60   :  { %839 = vmatprep.subr.bf16.mxu0 %v1647_v47  ;;  %v1712_v47 = vld [vmem:[#allocation2 + $0x2d0] ss:$8 sps:$4 sm:$0xff]  }
  0x62   :  { %795 = vmatpush1.bf16.msra.mxu1 %v1755_v14  ;;  %v1770_v14 = vld [vmem:[#allocation2 + $0x364] ss:$8 sps:$4 sm:$0xff]  }
  0x63   :  { %840 = vmatpush1.bf16.msra.mxu0 %v1649_v48  ;;  %796 = vmatprep.subr.bf16.mxu1 %v1759_v15  ;;  %v1797_v48 = vld [vmem:[#allocation4 + $0x64] ss:$8 sps:$4 sm:$0xff]   ;;  %v1768_v15 = vld [vmem:[#allocation2 + $0x360] ss:$8 sps:$4 sm:$0xff]  }
  0x64   :  { %850 = vmatprep.subr.bf16.mxu0 %v1654_v51  ;;  %v1718_v51 = vld [vmem:[#allocation2 + $0x2e0] ss:$8 sps:$4 sm:$0xff]  }
  0x66   :  { %842 = vmatmul.mubr.bf16.vlgmr.msra.gmra.mrb[0].mxu0 %v1397_v54  ;;  %797 = vmatpush1.bf16.msra.mxu1 %v1761_v18  ;;  %v1726_v54 = vld [vmem:[#allocation2 + $0x2f4] ss:$8 sps:$4 sm:$0xff]   ;;  %v1776_v18 = vld [vmem:[%s2054_s0 + $0x18] ss:$0 sps:$4 sm:$0xff]  }
  0x67   :  { %851 = vmatpush1.bf16.msra.mxu0 %v1652_v52  ;;  %882 = vmatprep.mubr.bf16.mxu0 %v1400_v58  ;;  %v1800_v52 = vld [vmem:[#allocation4 + $0x74] ss:$8 sps:$4 sm:$0xff]   ;;  %v1734_v58 = vld [vmem:[#allocation2 + $0x304] ss:$8 sps:$4 sm:$0xff]  }
  0x68   :  { %852 = vmatprep.subr.bf16.mxu0 %v1657_v57  ;;  %798 = vmatprep.subr.bf16.mxu1 %v1765_v19  ;;  %v1803_v57 = vld [vmem:[#allocation4 + $0x84] ss:$8 sps:$4 sm:$0xff]   ;;  %v1813_v19 = vld [vmem:[#allocation4 + $0xc0] ss:$8 sps:$4 sm:$0xff]  }
  0x6a   :  { %799 = vmatpush1.bf16.msra.mxu1 %v1767_v22  ;;  %v1816_v22 = vld [vmem:[#allocation4 + $0xd0] ss:$8 sps:$4 sm:$0xff]  }
  0x6b   :  { %853 = vmatpush1.bf16.msra.mxu0 %v1655_v59  ;;  %1142 = vmatprep.subr.bf16.mxu1 %v1779_v23  ;;  %v1399_v59 = vcombine.low %v1976_v53, %v1976_v53  ;;  %v1807_v53 = vld [vmem:[#allocation4 + $0xa0] ss:$8 sps:$4 sm:$0xff]   ;;  %v1821_v23 = vld [vmem:[#allocation4 + $0xe4] ss:$8 sps:$4 sm:$0xff]  }
  0x6c   :  { %854 = vmatprep.subr.bf16.mxu0 %v1660_v62  ;;  %v1740_v62 = vld [vmem:[#allocation2 + $0x314] ss:$8 sps:$4 sm:$0xff]  }
  0x6d   :  { %801 = vmatmul.mubr.bf16.vlgmr.msra.gmra.mrb[0].mxu1 %v1395_v27  ;;  %v1825_v27 = vld [vmem:[%s2059_s5 + $0x40] sm:$0xff]  }
  0x6e   :  { %1143 = vmatpush1.bf16.msra.mxu1 %v1777_v25  ;;  %v1824_v25 = vld [vmem:[#allocation4 + $0xf4] ss:$8 sps:$4 sm:$0xff]  }
  0x6f   :  { %855 = vmatpush1.bf16.msra.mxu0 %v1658_v63  ;;  %1144 = vmatprep.subr.bf16.mxu1 %v1782_v28  ;;  %v1806_v63 = vld [vmem:[#allocation4 + $0x94] ss:$8 sps:$4 sm:$0xff]  }
  0x70   :  { %856 = vmatprep.subr.bf16.mxu0 %v1663_v2  ;;  %v1901_v2 = vmov 0  }
  0x72   :  { %1145 = vmatpush1.bf16.msra.mxu1 %v1780_v30 }
  0x73   :  { %857 = vmatpush1.bf16.msra.mxu0 %v1661_v5  ;;  %1146 = vmatprep.subr.bf16.mxu1 %v1785_v32  ;;  %v1744_v5 = vld [vmem:[#allocation2 + $0x320] ss:$8 sps:$4 sm:$0xff]   ;;  %v173_v32 = vlaneseq }
  0x74   :  { %858 = vmatprep.subr.bf16.mxu0 %v1666_v8  ;;  %v1810_v8 = vld [vmem:[#allocation4 + $0xb0] ss:$8 sps:$4 sm:$0xff]  }
  0x76   :  { %1147 = vmatpush1.bf16.msra.mxu1 %v1783_v34 }
  0x77   :  { %859 = vmatpush1.bf16.msra.mxu0 %v1664_v9  ;;  %1148 = vmatprep.subr.bf16.mxu1 %v1788_v36  ;;  %v1750_v9 = vld [vmem:[#allocation2 + $0x330] ss:$8 sps:$4 sm:$0xff]  }
  0x78   :  { %860 = vmatprep.subr.bf16.mxu0 %v1669_v12  ;;  %v1764_v12 = vld [vmem:[#allocation2 + $0x354] ss:$8 sps:$4 sm:$0xff]  }
  0x7a   :  { %1149 = vmatpush1.bf16.msra.mxu1 %v1786_v38 }
  0x7b   :  { %861 = vmatpush1.bf16.msra.mxu0 %v1667_v13  ;;  %1150 = vmatprep.subr.bf16.mxu1 %v1791_v40  ;;  %v1762_v13 = vld [vmem:[#allocation2 + $0x350] ss:$8 sps:$4 sm:$0xff]  }
  0x7c   :  { %862 = vmatprep.subr.bf16.mxu0 %v1672_v16  ;;  %v1775_v16 = vld [vmem:[#allocation2 + $0x374] ss:$8 sps:$4 sm:$0xff]  }
  0x7e   :  { %1151 = vmatpush1.bf16.msra.mxu1 %v1789_v42 }
  0x7f   :  { %863 = vmatpush1.bf16.msra.mxu0 %v1670_v17  ;;  %1152 = vmatprep.subr.bf16.mxu1 %v1794_v44  ;;  %v1773_v17 = vld [vmem:[#allocation2 + $0x370] ss:$8 sps:$4 sm:$0xff]  }
  0x80   :  { %864 = vmatprep.subr.bf16.mxu0 %v1678_v20  ;;  %v1815_v20 = vld [vmem:[#allocation4 + $0xc4] ss:$8 sps:$4 sm:$0xff]  }
  0x82   :  { %1153 = vmatpush1.bf16.msra.mxu1 %v1792_v46 }
  0x83   :  { %865 = vmatpush1.bf16.msra.mxu0 %v1676_v21  ;;  %1154 = vmatprep.subr.bf16.mxu1 %v1797_v48  ;;  %v1818_v21 = vld [vmem:[#allocation4 + $0xd4] ss:$8 sps:$4 sm:$0xff]  }
  0x84   :  { %866 = vmatprep.subr.bf16.mxu0 %v1684_v24  ;;  %v1819_v24 = vld [vmem:[#allocation4 + $0xe0] ss:$8 sps:$4 sm:$0xff]  }
  0x86   :  { %1155 = vmatpush1.bf16.msra.mxu1 %v1795_v50 }
  0x87   :  { %867 = vmatpush1.bf16.msra.mxu0 %v1682_v26  ;;  %1156 = vmatprep.subr.bf16.mxu1 %v1800_v52  ;;  %v1822_v26 = vld [vmem:[#allocation4 + $0xf0] ss:$8 sps:$4 sm:$0xff]   ;;  %v1826_v52 = vld [vmem:[%s2059_s5] sm:$0xff]  }
  0x88   :  { %868 = vmatprep.subr.bf16.mxu0 %v1690_v29 }
  0x8a   :  { %1157 = vmatpush1.bf16.msra.mxu1 %v1798_v55  ;;  %v1827_v55 = vld [vmem:[%s2059_s5 + $0x48] sm:$0xff]  }
  0x8b   :  { %869 = vmatpush1.bf16.msra.mxu0 %v1688_v31  ;;  %1158 = vmatprep.subr.bf16.mxu1 %v1803_v57  ;;  %v1829_v57 = vld [vmem:[%s2059_s5 + $0x50] sm:$0xff]  }
  0x8c   :  { %870 = vmatprep.subr.bf16.mxu0 %v1696_v33  ;;  %v174_v33 = vshrl.u32 %v173_v32, 7 }
  0x8e   :  { %1159 = vmatpush1.bf16.msra.mxu1 %v1801_v60  ;;  %v175_v34 = vsub.s32 0, %v174_v33  ;;  %v179_v36 = vsub.s32 1, %v174_v33  ;;  %v1832_v60 = vld [vmem:[%s2059_s5 + $0x18] sm:$0xff]  }
  0x8f   :  { %871 = vmatpush1.bf16.msra.mxu0 %v1694_v35  ;;  %1160 = vmatprep.subr.bf16.mxu1 %v1806_v63  ;;  %v171_v35 = vld [vmem:[%s2056_s2] sm:$0x3]  ;;  %v1835_v63 = vld [vmem:[%s2059_s5 + $0x68] sm:$0xff]  }
  0x90   :  { %872 = vmatprep.subr.bf16.mxu0 %v1702_v37  ;;  %v176_v37 = vrot.slane %v171_v35, %v175_v34  ;;  %v180_v38 = vrot.slane %v171_v35, %v179_v36 }
  0x92   :  { %1161 = vmatpush1.bf16.msra.mxu1 %v1804_v0  ;;  %v1836_v0 = vld [vmem:[%s2059_s5 + $0x28] sm:$0xff]  }
  0x93   :  { %873 = vmatpush1.bf16.msra.mxu0 %v1700_v39  ;;  %1162 = vmatprep.subr.bf16.mxu1 %v1809_v3  ;;  %v1839_v3 = vld [vmem:[%s2059_s5 + $0x78] sm:$0xff]  }
  0x94   :  { %874 = vmatprep.subr.bf16.mxu0 %v1708_v41 }
  0x96   :  { %1163 = vmatpush1.bf16.msra.mxu1 %v1807_v53  ;;  %v970_v53 = vld [vmem:[%s2058_s4] sm:$0x3] }
  0x97   :  { %875 = vmatpush1.bf16.msra.mxu0 %v1706_v43  ;;  %1164 = vmatprep.subr.bf16.mxu1 %v1812_v6  ;;  %v979_v6 = vrot.slane %v970_v53, %v179_v36 }
  0x98   :  { %876 = vmatprep.subr.bf16.mxu0 %v1714_v45 }
  0x9a   :  { %1165 = vmatpush1.bf16.msra.mxu1 %v1810_v8 }
  0x9b   :  { %877 = vmatpush1.bf16.msra.mxu0 %v1712_v47  ;;  %1166 = vmatprep.subr.bf16.mxu1 %v1815_v20 }
  0x9c   :  { %878 = vmatprep.subr.bf16.mxu0 %v1720_v49 }
  0x9e   :  { %1167 = vmatpush1.bf16.msra.mxu1 %v1813_v19  ;;  %v1365_v19 = vand.u32 127, %v173_v32 }
  0x9f   :  { %879 = vmatpush1.bf16.msra.mxu0 %v1718_v51  ;;  %1168 = vmatprep.subr.bf16.mxu1 %v1818_v21 }
  0xa0   :  { %880 = vmatprep.subr.bf16.mxu0 %v1726_v54  ;;  %vm1366_vm0 = vcmp.lt.s32.totalorder %v1365_v19, 10  ;;  %vm1385_vm1 = vcmp.eq.s32.totalorder %v1365_v19, 10 }
  0xa2   :  { %1169 = vmatpush1.bf16.msra.mxu1 %v1816_v22  ;;  %v1546_v22 = vld [vmem:[%s2060_s6] ss:$0 sm:$0xff] }
  0xa3   :  { %881 = vmatpush1.bf16.msra.mxu0 %v1724_v56  ;;  %1170 = vmatprep.subr.bf16.mxu1 %v1821_v23  ;;  %v1828_v56 = vld [vmem:[%s2059_s5 + $0x8] sm:$0xff]  }
  0xa4   :  { %891 = vmatprep.subr.bf16.mxu0 %v1734_v58  ;;  %v1830_v58 = vld [vmem:[%s2059_s5 + $0x10] sm:$0xff]  }
  0xa6   :  { %883 = vmatmul.mubr.bf16.vlgmr.msra.gmra.mrb[0].mxu0 %v1399_v59  ;;  %1171 = vmatpush1.bf16.msra.mxu1 %v1819_v24  ;;  %v1831_v59 = vld [vmem:[%s2059_s5 + $0x58] sm:$0xff]  }
  0xa7   :  { %892 = vmatpush1.bf16.msra.mxu0 %v1732_v61  ;;  %923 = vmatprep.mubr.bf16.mxu0 %v1901_v2  ;;  %v1833_v61 = vld [vmem:[%s2059_s5 + $0x60] sm:$0xff]   ;;  %v1838_v2 = vld [vmem:[%s2059_s5 + $0x30] sm:$0xff]  }
  0xa8   :  { %893 = vmatprep.subr.bf16.mxu0 %v1740_v62  ;;  %1172 = vmatprep.subr.bf16.mxu1 %v1824_v25  ;;  %v1834_v62 = vld [vmem:[%s2059_s5 + $0x20] sm:$0xff]  }
  0xaa   :  { %1173 = vmatpush1.bf16.msra.mxu1 %v1822_v26 }
  0xab   :  { %894 = vmatpush1.bf16.msra.mxu0 %v1738_v1  ;;  %1563 = vmatprep.subr.bf16.mxu1 %v1825_v27  ;;  %v1837_v1 = vld [vmem:[%s2059_s5 + $0x70] sm:$0xff]  }
  0xac   :  { %895 = vmatprep.subr.bf16.mxu0 %v1746_v4  ;;  %v1840_v4 = vld [vmem:[%s2059_s5 + $0x38] sm:$0xff]  }
  0xaf   :  { %896 = vmatpush1.bf16.msra.mxu0 %v1744_v5  ;;  %v975_v5 = vrot.slane %v970_v53, %v175_v34 }
  0xb0   :  { %897 = vmatprep.subr.bf16.mxu0 %v1752_v7 }
  0xb3   :  { %898 = vmatpush1.bf16.msra.mxu0 %v1750_v9 }
  0xb4   :  { %899 = vmatprep.subr.bf16.mxu0 %v1758_v10 }
  0xb7   :  { %900 = vmatpush1.bf16.msra.mxu0 %v1756_v11 }
  0xb8   :  { %901 = vmatprep.subr.bf16.mxu0 %v1764_v12 }
  0xbb   :  { %902 = vmatpush1.bf16.msra.mxu0 %v1762_v13 }
  0xbc   :  { %903 = vmatprep.subr.bf16.mxu0 %v1770_v14 }
  0xbf   :  { %904 = vmatpush1.bf16.msra.mxu0 %v1768_v15 }
  0xc0   :  { %905 = vmatprep.subr.bf16.mxu0 %v1775_v16 }
  0xc3   :  { %906 = vmatpush1.bf16.msra.mxu0 %v1773_v17 }
  0xc6   :  { %924 = vmatmul.mubr.bf16.vlgmr.msra.gmra.mrb[0].mxu0 %v1776_v18 }
 0x140   :  { %v802_v28 = vpop.f32.mrb[0].mxu1 }
 0x141   :  { %v804_v29 = vpop.f32.mrb[1].mxu1  ;;  %v803_v39 = vadd.f32 %v802_v28, %v176_v37 }
 0x142   :  { %v806_v30 = vpop.f32.mrb[2].mxu1  ;;  %v805_v40 = vadd.f32 %v804_v29, %v180_v38 }
 0x143   :  { %v807_v31 = vpop.f32.mrb[3].mxu1 }
 0x199   :  { %v925_v41 = vpop.f32.mrb[0].mxu0 }
 0x19a   :  { %v1586_v42 = vadd.f32 %v925_v41, %v803_v39  ;;  %v927_v43 = vpop.f32.mrb[1].mxu0 }
 0x19b   :  { %v1588_v44 = vadd.f32 %v927_v43, %v805_v40  ;;  %v929_v45 = vpop.f32.mrb[2].mxu0 }
 0x19c   :  { %v932_v46 = vmul.f32 0.2, %v1586_v42  ;;  %v930_v47 = vpop.f32.mrb[3].mxu0 }
 0x19d   :  { %v933_v48 = vmul.f32 0.2, %v1588_v44 }
 0x19e   :  { %v934_v49 = vmax.f32 %v1586_v42, %v932_v46 }
 0x19f   :  { %v935_v50 = vmax.f32 %v1588_v44, %v933_v48 }
 0x1a0   :  { %v936_v54 = vpack.c.bf16 %v934_v49, %v934_v49 }
 0x1a1   :  { %v937_v51 = vpack.c.bf16 %v935_v50, %v935_v50 }
 0x1a3   :  { %1174 = vmatprep.mubr.bf16.mxu1 %v937_v51 }
 0x1a4   :  { %1175 = vmatmul.mubr.bf16.vlgmr.msra.gmra.mrb[4].mxu1 %v936_v54 }
 0x1a5   :  { %1564 = vmatpush3.bf16.msra.mxu1 %v1826_v52 }
 0x1a6   :  { %1565 = vmatprep.subr.bf16.mxu1 %v1827_v55 }
 0x1a9   :  { %1566 = vmatpush3.bf16.msra.mxu1 %v1828_v56 }
 0x1aa   :  { %1567 = vmatprep.subr.bf16.mxu1 %v1829_v57 }
 0x1ad   :  { %1568 = vmatpush3.bf16.msra.mxu1 %v1830_v58 }
 0x1ae   :  { %1569 = vmatprep.subr.bf16.mxu1 %v1831_v59 }
 0x1b1   :  { %1570 = vmatpush3.bf16.msra.mxu1 %v1832_v60 }
 0x1b2   :  { %1571 = vmatprep.subr.bf16.mxu1 %v1833_v61 }
 0x1b5   :  { %1572 = vmatpush3.bf16.msra.mxu1 %v1834_v62 }
 0x1b6   :  { %1573 = vmatprep.subr.bf16.mxu1 %v1835_v63 }
 0x1b9   :  { %1574 = vmatpush3.bf16.msra.mxu1 %v1836_v0 }
 0x1ba   :  { %1575 = vmatprep.subr.bf16.mxu1 %v1837_v1 }
 0x1bd   :  { %1576 = vmatpush3.bf16.msra.mxu1 %v1838_v2 }
 0x1be   :  { %1577 = vmatprep.subr.bf16.mxu1 %v1839_v3 }
 0x1c1   :  { %1578 = vmatpush3.bf16.msra.mxu1 %v1840_v4 }
 0x277   :  { %v1176_v7 = vpop.f32.mrb[4].mxu1 }
 0x278   :  { %v1177_v8 = vadd.f32 %v1176_v7, %v975_v5  ;;  %v1178_v9 = vpop.f32.mrb[5].mxu1 }
 0x279   :  { %v1179_v10 = vadd.f32 %v1178_v9, %v979_v6  ;;  %v1180_v11 = vpop.f32.mrb[6].mxu1 }
 0x27a   :  { %v1183_v12 = vmul.f32 0.01, %v1177_v8  ;;  %v1181_v13 = vpop.f32.mrb[7].mxu1 }
 0x27b   :  { %v1184_v14 = vmul.f32 0.01, %v1179_v10 }
 0x27c   :  { %v1185_v15 = vmax.f32 %v1177_v8, %v1183_v12 }
 0x27d   :  { %v1186_v16 = vmax.f32 %v1179_v10, %v1184_v14 }
 0x27e   :  { %v1187_v18 = vpack.c.bf16 %v1185_v15, %v1185_v15 }
 0x27f   :  { %v1188_v17 = vpack.c.bf16 %v1186_v16, %v1186_v16 }
 0x281   :  { %1356 = vmatprep.mubr.bf16.mxu1 %v1188_v17 }
 0x282   :  { %1357 = vmatmul.mubr.bf16.vlgmr.msra.gmra.mrb[8].mxu1 %v1187_v18 }
 0x355   :  { %v1579_v20 = vpop.f32.mrb[8].mxu1 }
 0x356   :  { %v1580_v21 = vpop.f32.mrb[9].mxu1 }
 0x357   :  { %v1581_v23 = vadd.f32 %v1580_v21, %v1579_v20  ;;  %v1582_v24 = vpop.f32.mrb[10].mxu1 }
 0x358   :  { %v1583_v25 = vpop.f32.mrb[11].mxu1 }
 0x359   :  { %v1359_v26 = vadd.f32 %v1581_v23, %v1546_v22 }
 0x35b   :  { %v1367_v27 = vsel %vm1366_vm0, %v1359_v26, -1e+30 }
 0x35c   :  { %1368 = vmax.xlane.f32.xlu0 %v1367_v27 }
 0x3e9   :  { %v1369_v28 = vpop.xlane.xlu0 %1368 }
 0x3ea   :  { %v1370_v29 = vsub.f32 %v1367_v27, %v1369_v28 }
 0x3ec   :  { %v1371_v30 = vmul.f32 1.442695, %v1370_v29 }
 0x3ee   :  { %1841 = vpow2.f32 %v1371_v30 }
 0x3f8   :  { %v1842_v31 = vpop.eup %1841 }
 0x3f9   :  { %1373 = vadd.xlane.f32.xlu0 %v1842_v31 }
 0x486   :  { %v1374_v32 = vpop.xlane.xlu0 %1373 }
 0x487   :  { %1843 = vrcp.f32 %v1374_v32 }
 0x491   :  { %v1844_v33 = vpop.eup %1843 }
 0x492   :  { %v1376_v34 = vmul.f32 %v1844_v33, %v1842_v31 }
 0x494   :  { %v1377_v35 = vmul.f32 1.442695, %v1376_v34 }
 0x496   :  { %1845 = vpow2.f32 %v1377_v35 }
 0x4a0   :  { %v1846_v36 = vpop.eup %1845 }
 0x4a1   :  { %v1379_v37 = vsel %vm1366_vm0, %v1846_v36, 0.0 }
 0x4a2   :  { %1380 = vadd.xlane.f32.xlu1 %v1379_v37 }
 0x52f   :  { %v1381_v38 = vpop.xlane.xlu1 %1380 }
 0x530   :  { %v1382_v39 = vadd.f32 1.0, %v1381_v38 }
 0x532   :  { %1847 = vrcp.f32 %v1382_v39 }
 0x53c   :  { %v1848_v40 = vpop.eup %1847 }
 0x53d   :  { %v1384_v41 = vsub.f32 1.0, %v1848_v40 }
 0x53f   :  { %v1386_v42 = vsel %vm1385_vm1, %v1384_v41, 0.0 }
 0x540   :  { %v1387_v43 = vadd.f32 %v1386_v42, %v1376_v34 }
 0x542   :  { %1388 = vst [vmem:[%s2061_s7] sm:$0xff] %v1387_v43 }
 0x543   :  { %1393 = vsyncpa [#allocation3], 1 }
 0x544   :  { %1394 = vsyncpa [#allocation5], 1 }

</bundles_post_ra>
